<compile_context>
chip_gen: v7x
topology: tpu7x:2x2x1
jax: 0.10.0
libtpu: 0.0.40
codegen_flags: <defaults>
</compile_context>

<pallas_src>
import functools
import math

import jax
import jax.numpy as jnp
from jax.experimental import pallas as pl
from jax.experimental.pallas import tpu as pltpu


# ----------------------------------------------------------------------------
# Generation detection / sizing helpers
# ----------------------------------------------------------------------------
def _device_kind():
    try:
        return jax.devices()[0].device_kind.lower()
    except Exception:
        return ""


def _is_v7x(kind):
    return "7" in kind


def _num_splits(kind):
    # Single-TensorCore generations -> no point in a core-split grid axis.
    single_tc_tags = ("v5 lite", "v5e", "v5lite", "v6 lite", "v6e", "v2", "v3")
    if any(t in kind for t in single_tc_tags):
        return 1
    return 2  # v7x (2 TCs) and megacore chips; harmless default elsewhere.


def _target_pair_bytes(kind):
    # v7x: faster HBM per TC -> bigger blocks to amortize per-step overhead,
    # still far under its 64 MiB VMEM.  v5e/v6e keep 8 MiB pairs.
    return (16 << 20) if _is_v7x(kind) else (8 << 20)


def _padded_rows(rows, itemsize):
    # Sublane padding of the second-to-last dim in VMEM: 8 for f32, 16 for
    # bf16, 32 for 1-byte dtypes.  Used so the VMEM budget is honest.
    sub = 8 * max(1, 4 // max(1, itemsize))
    return -(-rows // sub) * sub


def _choose_tile_hw(F, BC, HW, x_itemsize, y_itemsize, target_pair_bytes):
    bytes_per_lane = F * (_padded_rows(BC, x_itemsize) * x_itemsize +
                          _padded_rows(BC, y_itemsize) * y_itemsize)
    tile = target_pair_bytes // max(1, bytes_per_lane)
    tile = max(128, (tile // 128) * 128)
    return HW if tile >= HW else tile


# ----------------------------------------------------------------------------
# Pallas kernel: sum over F bands of |x_f - y_f|, accumulated over lane tiles.
# ----------------------------------------------------------------------------
def _l1_sum_kernel(*refs, F, hw, tile_hw, tiles_per_split, n_tiles, n_split):
    x_refs = refs[:F]          # F refs, each (BC, tile_hw)
    y_ref = refs[F]            # (F, BC, tile_hw)
    out_ref = refs[F + 1]      # (1, 1, 1) per-split accumulator (resident)

    s = pl.program_id(0)       # TensorCore split ("parallel")
    j = pl.program_id(1)       # lane tile within the split ("arbitrary")

    @pl.when(j == 0)
    def _init():
        out_ref[...] = jnp.zeros_like(out_ref)

    def tile_sum(masked):
        tot = jnp.zeros((1, 1), jnp.float32)
        for f in range(F):
            d = jnp.abs(x_refs[f][...].astype(jnp.float32)
                        - y_ref[f].astype(jnp.float32))
            if masked:
                # Zero lanes past the valid range (partial trailing tile and
                # fully out-of-range padded tiles of the ceil core-split).
                start = (s * tiles_per_split + j) * tile_hw
                lane = jax.lax.broadcasted_iota(jnp.int32, d.shape, 1)
                d = jnp.where(start + lane < hw, d, jnp.float32(0.0))
            tot = tot + jnp.sum(d, keepdims=True)
        return tot

    has_partial = (hw % tile_hw) != 0
    first_masked = (n_tiles - 1) if has_partial else n_tiles

    if n_split * tiles_per_split > first_masked:
        # Only the trailing / padded tiles pay the masking VALU work.
        g = s * tiles_per_split + j

        @pl.when(g < first_masked)
        def _full():
            out_ref[0] += tile_sum(False)

        @pl.when(g >= first_masked)
        def _masked():
            out_ref[0] += tile_sum(True)
    else:
        out_ref[0] += tile_sum(False)


def deep_supervision_l1_sum(x_bands, y_bands, *, tile_hw=None, n_split=None):
    """x_bands: list of F arrays (BC, HW) (any float dtype, free reshapes of
    the original buffers); y_bands: (F, BC, HW) float32.

    Returns scalar float32 = sum over bands of sum|x - y| via one Pallas call.
    """
    F = len(x_bands)
    BC, HW = x_bands[0].shape
    assert y_bands.shape == (F, BC, HW)
    for x in x_bands:
        assert x.shape == (BC, HW)
    assert HW < 2 ** 30  # int32 lane-index math inside the kernel

    kind = _device_kind()
    x_isize = jnp.dtype(x_bands[0].dtype).itemsize
    y_isize = jnp.dtype(y_bands.dtype).itemsize
    if tile_hw is None:
        tile_hw = _choose_tile_hw(F, BC, HW, x_isize, y_isize,
                                  _target_pair_bytes(kind))

    n_tiles = -(-HW // tile_hw)
    if n_split is None:
        n_split = _num_splits(kind)
    n_split = max(1, min(n_split, n_tiles))
    tiles_per_split = -(-n_tiles // n_split)  # ceil: padded tiles are masked

    def x_map(s, j):
        return (0, jnp.minimum(s * tiles_per_split + j, n_tiles - 1))

    def y_map(s, j):
        return (0, 0, jnp.minimum(s * tiles_per_split + j, n_tiles - 1))

    # VMEM budget from actual (sublane-padded) block bytes, double-buffered.
    pair_bytes = F * tile_hw * (_padded_rows(BC, x_isize) * x_isize +
                                _padded_rows(BC, y_isize) * y_isize)
    vmem_limit = int(min(48 << 20, max(16 << 20, 2 * pair_bytes + (4 << 20))))

    kernel = functools.partial(
        _l1_sum_kernel, F=F, hw=HW, tile_hw=tile_hw,
        tiles_per_split=tiles_per_split, n_tiles=n_tiles, n_split=n_split)

    out = pl.pallas_call(
        kernel,
        out_shape=jax.ShapeDtypeStruct((n_split, 1, 1), jnp.float32),
        grid_spec=pltpu.PrefetchScalarGridSpec(
            num_scalar_prefetch=0,
            grid=(n_split, tiles_per_split),
            in_specs=[pl.BlockSpec((BC, tile_hw), x_map) for _ in range(F)]
                    + [pl.BlockSpec((F, BC, tile_hw), y_map)],
            out_specs=pl.BlockSpec((1, 1, 1), lambda s, j: (s, 0, 0)),
        ),
        compiler_params=pltpu.CompilerParams(
            dimension_semantics=("parallel", "arbitrary"),
            vmem_limit_bytes=vmem_limit,
        ),
    )(*x_bands, y_bands)
    return jnp.sum(out)


# ----------------------------------------------------------------------------
# Split_freq (butterworth, low-to-high) -- real-FFT glue in plain JAX.
# ----------------------------------------------------------------------------
def butterworth_band_masks_half(H, W, freq_c, order=4):
    """Half-spectrum (rfft) butterworth band masks, (F, H, W//2+1), low->high."""
    fy = jnp.fft.fftfreq(H).astype(jnp.float32)
    fx = jnp.fft.rfftfreq(W).astype(jnp.float32)
    D = jnp.sqrt(fy[:, None] ** 2 + fx[None, :] ** 2)
    d_max = math.sqrt(0.5)  # max radial frequency
    cutoffs = [d_max * (i + 1) / freq_c for i in range(freq_c - 1)]

    masks, prev = [], jnp.zeros_like(D)
    for c in cutoffs:
        lp = 1.0 / (1.0 + (D / c) ** (2 * order))
        masks.append(lp - prev)
        prev = lp
    masks.append(jnp.ones_like(D) - prev)  # residual high band
    return jnp.stack(masks)


def split_freq(y, freq_c, mode="butterworth"):
    """y: (B, C, H, W) real.  Returns (F, B, C, H, W) float32 bands, low->high.

    Uses rfft2/irfft2 (masks are radially symmetric so the masked spectrum
    stays Hermitian) -- same values as fft2/ifft2 + real at half the FFT cost.
    """
    assert mode == "butterworth"
    B, C, H, W = y.shape
    masks = butterworth_band_masks_half(H, W, freq_c)          # (F, H, Wh)
    Yf = jnp.fft.rfft2(y.astype(jnp.float32), axes=(-2, -1))   # (B, C, H, Wh)
    bands = jnp.fft.irfft2(Yf[None] * masks[:, None, None],
                           s=(H, W), axes=(-2, -1))            # (F, B, C, H, W)
    return bands.astype(jnp.float32)


# ----------------------------------------------------------------------------
# Module forward
# ----------------------------------------------------------------------------
def l1_deep_supervision_frequency_division_loss(
    X, Y, freq_c=8, color_channel=3, mode="butterworth", freq_order="l2h"
):
    del color_channel
    if freq_order == "h2l":
        freq_rev = True
    elif freq_order == "l2h":
        freq_rev = False
    else:
        raise ValueError("Frequency Order can only choose 'l2h' or 'h2l'")

    _, X_f = X
    X_f = list(X_f)
    if freq_rev:
        # Pairing X_f[i] with Y_f[F-1-i] == pairing reversed(X_f) with Y_f.
        # Reversing the Python list is free; Y_bands[::-1] would copy F*N*4 B.
        X_f = X_f[::-1]

    Y_bands = split_freq(Y, freq_c, mode)          # (F, B, C, H, W) float32
    F = len(X_f)
    assert Y_bands.shape[0] == F
    B, C, H, W = X_f[0].shape
    n_elem = B * C * H * W

    # Free, contiguous reshapes only -- no stacking / concatenation of X.
    x2 = [x.reshape(B * C, H * W) for x in X_f]
    y2 = Y_bands.reshape(F, B * C, H * W)

    total = deep_supervision_l1_sum(x2, y2)        # Pallas kernel
    # All bands share the same element count, so sum of per-band means is the
    # grand sum divided once by n_elem.
    return total / jnp.float32(n_elem)


# ----------------------------------------------------------------------------
if __name__ == "__main__":
    FREQ_C = 8

    def ref_loss(X_f, Y_bands):
        return sum(jnp.mean(jnp.abs(x.astype(jnp.float32) - y))
                   for x, y in zip(X_f, list(Y_bands)))

    key = jax.random.PRNGKey(0)
    ky, kx = jax.random.split(key)
    B, C, H, W = 2, 3, 16, 16
    Y = jax.random.normal(ky, (B, C, H, W), dtype=jnp.float32)
    X_f = [jax.random.normal(k, (B, C, H, W), dtype=jnp.float32)
           for k in jax.random.split(kx, FREQ_C)]
    X = (None, X_f)

    # l2h (default) ordering
    loss = l1_deep_supervision_frequency_division_loss(
        X, Y, freq_c=FREQ_C, color_channel=C, mode="butterworth",
        freq_order="l2h")
    loss = jax.block_until_ready(loss)
    Y_bands = split_freq(Y, FREQ_C)
    ref = ref_loss(X_f, Y_bands)
    assert jnp.allclose(loss, ref, rtol=1e-5, atol=1e-5), (loss, ref)

    # h2l ordering (list reversal path, no Y-band copy)
    loss_rev = l1_deep_supervision_frequency_division_loss(
        X, Y, freq_c=FREQ_C, color_channel=C, freq_order="h2l")
    loss_rev = jax.block_until_ready(loss_rev)
    ref_rev = ref_loss(X_f, list(Y_bands)[::-1])
    assert jnp.allclose(loss_rev, ref_rev, rtol=1e-5, atol=1e-5), (loss_rev, ref_rev)

    # Exercise the multi-tile / masked-partial / padded-core-split kernel paths
    # directly at small shapes by forcing tile_hw and n_split.
    def kernel_case(BC, HW, tile_hw, n_split):
        kk = jax.random.split(jax.random.PRNGKey(1), FREQ_C + 1)
        xs = [jax.random.normal(kk[f], (BC, HW), dtype=jnp.float32)
              for f in range(FREQ_C)]
        ys = jax.random.normal(kk[-1], (FREQ_C, BC, HW), dtype=jnp.float32)
        got = jax.block_until_ready(
            deep_supervision_l1_sum(xs, ys, tile_hw=tile_hw, n_split=n_split))
        want = sum(jnp.sum(jnp.abs(x - ys[f])) for f, x in enumerate(xs))
        assert jnp.allclose(got, want, rtol=1e-4, atol=1e-2), (got, want)

    kernel_case(6, 144, 128, 2)   # partial trailing lane tile + 2-way split
    kernel_case(8, 384, 128, 2)   # odd tile count -> fully masked padded tile
    kernel_case(6, 256, 128, 1)   # multi-tile, single split

    print("KERNEL_OK")
</pallas_src>

<mosaic_0001>
module attributes {stable_mosaic.version = 11 : i64} {
  func.func @_l1_sum_kernel(%arg0: i32, %arg1: i32, %arg2: memref<6x256xf32, #tpu.memory_space<vmem>>, %arg3: memref<6x256xf32, #tpu.memory_space<vmem>>, %arg4: memref<6x256xf32, #tpu.memory_space<vmem>>, %arg5: memref<6x256xf32, #tpu.memory_space<vmem>>, %arg6: memref<6x256xf32, #tpu.memory_space<vmem>>, %arg7: memref<6x256xf32, #tpu.memory_space<vmem>>, %arg8: memref<6x256xf32, #tpu.memory_space<vmem>>, %arg9: memref<6x256xf32, #tpu.memory_space<vmem>>, %arg10: memref<8x6x256xf32, #tpu.memory_space<vmem>>, %arg11: memref<1x1x1xf32, #tpu.memory_space<vmem>>) attributes {dimension_semantics = [#tpu.dimension_semantics<parallel>, #tpu.dimension_semantics<arbitrary>], iteration_bounds = array<i64: 1, 1>, scalar_prefetch = 0 : i64, scratch_operands = 0 : i64, tpu.core_type = #tpu.core_type<tc>, window_params = [{transform_indices = @transform_0, window_bounds = array<i64: 6, 256>}, {transform_indices = @transform_1, window_bounds = array<i64: 6, 256>}, {transform_indices = @transform_2, window_bounds = array<i64: 6, 256>}, {transform_indices = @transform_3, window_bounds = array<i64: 6, 256>}, {transform_indices = @transform_4, window_bounds = array<i64: 6, 256>}, {transform_indices = @transform_5, window_bounds = array<i64: 6, 256>}, {transform_indices = @transform_6, window_bounds = array<i64: 6, 256>}, {transform_indices = @transform_7, window_bounds = array<i64: 6, 256>}, {transform_indices = @transform_8, window_bounds = array<i64: 8, 6, 256>}, {transform_indices = @transform_9, window_bounds = array<i64: 1, 1, 1>}]} {
    %c0_i32 = arith.constant 0 : i32
    %0 = arith.cmpi eq, %arg1, %c0_i32 : i32
    %1 = arith.extui %0 : i1 to i32
    %c0_i32_0 = arith.constant 0 : i32
    %2 = arith.cmpi ne, %1, %c0_i32_0 : i32
    scf.if %2 {
      %cst_47 = arith.constant 0.000000e+00 : f32
      %98 = vector.broadcast %cst_47 : f32 to vector<1x1x1xf32>
      %c0_48 = arith.constant 0 : index
      %c0_49 = arith.constant 0 : index
      %c0_50 = arith.constant 0 : index
      %99 = vector.load %arg11[%c0_48, %c0_49, %c0_50] : memref<1x1x1xf32, #tpu.memory_space<vmem>>, vector<1x1x1xf32>
      tpu.vector_store %arg11[%c0_48, %c0_49, %c0_50], %98 {strides = array<i32>} : memref<1x1x1xf32, #tpu.memory_space<vmem>>, vector<1x1x1xf32>,
    } else {
    }
    %c0 = arith.constant 0 : index
    %c0_1 = arith.constant 0 : index
    %c0_2 = arith.constant 0 : index
    %3 = vector.load %arg11[%c0, %c0_1, %c0_2] : memref<1x1x1xf32, #tpu.memory_space<vmem>>, vector<1x1x1xf32>
    %4 = vector.shape_cast %3 : vector<1x1x1xf32> to vector<1x1xf32>
    %cst = arith.constant 0.000000e+00 : f32
    %5 = vector.broadcast %cst : f32 to vector<1x1xf32>
    %c0_3 = arith.constant 0 : index
    %c0_4 = arith.constant 0 : index
    %6 = vector.load %arg2[%c0_3, %c0_4] : memref<6x256xf32, #tpu.memory_space<vmem>>, vector<6x256xf32>
    %c0_5 = arith.constant 0 : index
    %c0_6 = arith.constant 0 : index
    %c0_7 = arith.constant 0 : index
    %7 = vector.load %arg10[%c0_5, %c0_6, %c0_7] : memref<8x6x256xf32, #tpu.memory_space<vmem>>, vector<1x6x256xf32>
    %8 = vector.shape_cast %7 : vector<1x6x256xf32> to vector<6x256xf32>
    %9 = arith.subf %6, %8 : vector<6x256xf32>
    %10 = math.absf %9 : vector<6x256xf32>
    %11 = vector.shape_cast %10 : vector<6x256xf32> to vector<1x6x256xf32>
    %cst_8 = arith.constant dense<0.000000e+00> : vector<1xf32>
    %12 = vector.multi_reduction <add>, %11, %cst_8 [1, 2] : vector<1x6x256xf32> to vector<1xf32>
    %13 = vector.shape_cast %12 : vector<1xf32> to vector<1x1x1xf32>
    %14 = vector.extract %13[0, 0, 0] : f32 from vector<1x1x1xf32>
    %15 = vector.broadcast %14 : f32 to vector<1x1xf32>
    %16 = arith.addf %5, %15 : vector<1x1xf32>
    %c0_9 = arith.constant 0 : index
    %c0_10 = arith.constant 0 : index
    %17 = vector.load %arg3[%c0_9, %c0_10] : memref<6x256xf32, #tpu.memory_space<vmem>>, vector<6x256xf32>
    %c1 = arith.constant 1 : index
    %c0_11 = arith.constant 0 : index
    %c0_12 = arith.constant 0 : index
    %18 = vector.load %arg10[%c1, %c0_11, %c0_12] : memref<8x6x256xf32, #tpu.memory_space<vmem>>, vector<1x6x256xf32>
    %19 = vector.shape_cast %18 : vector<1x6x256xf32> to vector<6x256xf32>
    %20 = arith.subf %17, %19 : vector<6x256xf32>
    %21 = math.absf %20 : vector<6x256xf32>
    %22 = vector.shape_cast %21 : vector<6x256xf32> to vector<1x6x256xf32>
    %cst_13 = arith.constant dense<0.000000e+00> : vector<1xf32>
    %23 = vector.multi_reduction <add>, %22, %cst_13 [1, 2] : vector<1x6x256xf32> to vector<1xf32>
    %24 = vector.shape_cast %23 : vector<1xf32> to vector<1x1x1xf32>
    %25 = vector.extract %24[0, 0, 0] : f32 from vector<1x1x1xf32>
    %26 = vector.broadcast %25 : f32 to vector<1x1xf32>
    %27 = arith.addf %16, %26 : vector<1x1xf32>
    %c0_14 = arith.constant 0 : index
    %c0_15 = arith.constant 0 : index
    %28 = vector.load %arg4[%c0_14, %c0_15] : memref<6x256xf32, #tpu.memory_space<vmem>>, vector<6x256xf32>
    %c2 = arith.constant 2 : index
    %c0_16 = arith.constant 0 : index
    %c0_17 = arith.constant 0 : index
    %29 = vector.load %arg10[%c2, %c0_16, %c0_17] : memref<8x6x256xf32, #tpu.memory_space<vmem>>, vector<1x6x256xf32>
    %30 = vector.shape_cast %29 : vector<1x6x256xf32> to vector<6x256xf32>
    %31 = arith.subf %28, %30 : vector<6x256xf32>
    %32 = math.absf %31 : vector<6x256xf32>
    %33 = vector.shape_cast %32 : vector<6x256xf32> to vector<1x6x256xf32>
    %cst_18 = arith.constant dense<0.000000e+00> : vector<1xf32>
    %34 = vector.multi_reduction <add>, %33, %cst_18 [1, 2] : vector<1x6x256xf32> to vector<1xf32>
    %35 = vector.shape_cast %34 : vector<1xf32> to vector<1x1x1xf32>
    %36 = vector.extract %35[0, 0, 0] : f32 from vector<1x1x1xf32>
    %37 = vector.broadcast %36 : f32 to vector<1x1xf32>
    %38 = arith.addf %27, %37 : vector<1x1xf32>
    %c0_19 = arith.constant 0 : index
    %c0_20 = arith.constant 0 : index
    %39 = vector.load %arg5[%c0_19, %c0_20] : memref<6x256xf32, #tpu.memory_space<vmem>>, vector<6x256xf32>
    %c3 = arith.constant 3 : index
    %c0_21 = arith.constant 0 : index
    %c0_22 = arith.constant 0 : index
    %40 = vector.load %arg10[%c3, %c0_21, %c0_22] : memref<8x6x256xf32, #tpu.memory_space<vmem>>, vector<1x6x256xf32>
    %41 = vector.shape_cast %40 : vector<1x6x256xf32> to vector<6x256xf32>
    %42 = arith.subf %39, %41 : vector<6x256xf32>
    %43 = math.absf %42 : vector<6x256xf32>
    %44 = vector.shape_cast %43 : vector<6x256xf32> to vector<1x6x256xf32>
    %cst_23 = arith.constant dense<0.000000e+00> : vector<1xf32>
    %45 = vector.multi_reduction <add>, %44, %cst_23 [1, 2] : vector<1x6x256xf32> to vector<1xf32>
    %46 = vector.shape_cast %45 : vector<1xf32> to vector<1x1x1xf32>
    %47 = vector.extract %46[0, 0, 0] : f32 from vector<1x1x1xf32>
    %48 = vector.broadcast %47 : f32 to vector<1x1xf32>
    %49 = arith.addf %38, %48 : vector<1x1xf32>
    %c0_24 = arith.constant 0 : index
    %c0_25 = arith.constant 0 : index
    %50 = vector.load %arg6[%c0_24, %c0_25] : memref<6x256xf32, #tpu.memory_space<vmem>>, vector<6x256xf32>
    %c4 = arith.constant 4 : index
    %c0_26 = arith.constant 0 : index
    %c0_27 = arith.constant 0 : index
    %51 = vector.load %arg10[%c4, %c0_26, %c0_27] : memref<8x6x256xf32, #tpu.memory_space<vmem>>, vector<1x6x256xf32>
    %52 = vector.shape_cast %51 : vector<1x6x256xf32> to vector<6x256xf32>
    %53 = arith.subf %50, %52 : vector<6x256xf32>
    %54 = math.absf %53 : vector<6x256xf32>
    %55 = vector.shape_cast %54 : vector<6x256xf32> to vector<1x6x256xf32>
    %cst_28 = arith.constant dense<0.000000e+00> : vector<1xf32>
    %56 = vector.multi_reduction <add>, %55, %cst_28 [1, 2] : vector<1x6x256xf32> to vector<1xf32>
    %57 = vector.shape_cast %56 : vector<1xf32> to vector<1x1x1xf32>
    %58 = vector.extract %57[0, 0, 0] : f32 from vector<1x1x1xf32>
    %59 = vector.broadcast %58 : f32 to vector<1x1xf32>
    %60 = arith.addf %49, %59 : vector<1x1xf32>
    %c0_29 = arith.constant 0 : index
    %c0_30 = arith.constant 0 : index
    %61 = vector.load %arg7[%c0_29, %c0_30] : memref<6x256xf32, #tpu.memory_space<vmem>>, vector<6x256xf32>
    %c5 = arith.constant 5 : index
    %c0_31 = arith.constant 0 : index
    %c0_32 = arith.constant 0 : index
    %62 = vector.load %arg10[%c5, %c0_31, %c0_32] : memref<8x6x256xf32, #tpu.memory_space<vmem>>, vector<1x6x256xf32>
    %63 = vector.shape_cast %62 : vector<1x6x256xf32> to vector<6x256xf32>
    %64 = arith.subf %61, %63 : vector<6x256xf32>
    %65 = math.absf %64 : vector<6x256xf32>
    %66 = vector.shape_cast %65 : vector<6x256xf32> to vector<1x6x256xf32>
    %cst_33 = arith.constant dense<0.000000e+00> : vector<1xf32>
    %67 = vector.multi_reduction <add>, %66, %cst_33 [1, 2] : vector<1x6x256xf32> to vector<1xf32>
    %68 = vector.shape_cast %67 : vector<1xf32> to vector<1x1x1xf32>
    %69 = vector.extract %68[0, 0, 0] : f32 from vector<1x1x1xf32>
    %70 = vector.broadcast %69 : f32 to vector<1x1xf32>
    %71 = arith.addf %60, %70 : vector<1x1xf32>
    %c0_34 = arith.constant 0 : index
    %c0_35 = arith.constant 0 : index
    %72 = vector.load %arg8[%c0_34, %c0_35] : memref<6x256xf32, #tpu.memory_space<vmem>>, vector<6x256xf32>
    %c6 = arith.constant 6 : index
    %c0_36 = arith.constant 0 : index
    %c0_37 = arith.constant 0 : index
    %73 = vector.load %arg10[%c6, %c0_36, %c0_37] : memref<8x6x256xf32, #tpu.memory_space<vmem>>, vector<1x6x256xf32>
    %74 = vector.shape_cast %73 : vector<1x6x256xf32> to vector<6x256xf32>
    %75 = arith.subf %72, %74 : vector<6x256xf32>
    %76 = math.absf %75 : vector<6x256xf32>
    %77 = vector.shape_cast %76 : vector<6x256xf32> to vector<1x6x256xf32>
    %cst_38 = arith.constant dense<0.000000e+00> : vector<1xf32>
    %78 = vector.multi_reduction <add>, %77, %cst_38 [1, 2] : vector<1x6x256xf32> to vector<1xf32>
    %79 = vector.shape_cast %78 : vector<1xf32> to vector<1x1x1xf32>
    %80 = vector.extract %79[0, 0, 0] : f32 from vector<1x1x1xf32>
    %81 = vector.broadcast %80 : f32 to vector<1x1xf32>
    %82 = arith.addf %71, %81 : vector<1x1xf32>
    %c0_39 = arith.constant 0 : index
    %c0_40 = arith.constant 0 : index
    %83 = vector.load %arg9[%c0_39, %c0_40] : memref<6x256xf32, #tpu.memory_space<vmem>>, vector<6x256xf32>
    %c7 = arith.constant 7 : index
    %c0_41 = arith.constant 0 : index
    %c0_42 = arith.constant 0 : index
    %84 = vector.load %arg10[%c7, %c0_41, %c0_42] : memref<8x6x256xf32, #tpu.memory_space<vmem>>, vector<1x6x256xf32>
    %85 = vector.shape_cast %84 : vector<1x6x256xf32> to vector<6x256xf32>
    %86 = arith.subf %83, %85 : vector<6x256xf32>
    %87 = math.absf %86 : vector<6x256xf32>
    %88 = vector.shape_cast %87 : vector<6x256xf32> to vector<1x6x256xf32>
    %cst_43 = arith.constant dense<0.000000e+00> : vector<1xf32>
    %89 = vector.multi_reduction <add>, %88, %cst_43 [1, 2] : vector<1x6x256xf32> to vector<1xf32>
    %90 = vector.shape_cast %89 : vector<1xf32> to vector<1x1x1xf32>
    %91 = vector.extract %90[0, 0, 0] : f32 from vector<1x1x1xf32>
    %92 = vector.broadcast %91 : f32 to vector<1x1xf32>
    %93 = arith.addf %82, %92 : vector<1x1xf32>
    %94 = arith.addf %4, %93 : vector<1x1xf32>
    %c0_44 = arith.constant 0 : index
    %c0_45 = arith.constant 0 : index
    %c0_46 = arith.constant 0 : index
    %95 = vector.load %arg11[%c0_44, %c0_45, %c0_46] : memref<1x1x1xf32, #tpu.memory_space<vmem>>, vector<1x1x1xf32>
    %96 = vector.shape_cast %95 : vector<1x1x1xf32> to vector<1x1xf32>
    %97 = vector.shape_cast %94 : vector<1x1xf32> to vector<1x1x1xf32>
    tpu.vector_store %arg11[%c0_44, %c0_45, %c0_46], %97 {strides = array<i32>} : memref<1x1x1xf32, #tpu.memory_space<vmem>>, vector<1x1x1xf32>,
    return
  }
  func.func @transform_0(%arg0: i32, %arg1: i32) -> (i32, i32) {
    %c1_i32 = arith.constant 1 : i32
    %0 = arith.muli %arg0, %c1_i32 : i32
    %1 = arith.addi %0, %arg1 : i32
    %c0_i32 = arith.constant 0 : i32
    %2 = arith.minsi %1, %c0_i32 : i32
    %c0_i32_0 = arith.constant 0 : i32
    %c0_i32_1 = arith.constant 0 : i32
    return %c0_i32_0, %2 : i32, i32
  }
  func.func @transform_1(%arg0: i32, %arg1: i32) -> (i32, i32) {
    %c1_i32 = arith.constant 1 : i32
    %0 = arith.muli %arg0, %c1_i32 : i32
    %1 = arith.addi %0, %arg1 : i32
    %c0_i32 = arith.constant 0 : i32
    %2 = arith.minsi %1, %c0_i32 : i32
    %c0_i32_0 = arith.constant 0 : i32
    %c0_i32_1 = arith.constant 0 : i32
    return %c0_i32_0, %2 : i32, i32
  }
  func.func @transform_2(%arg0: i32, %arg1: i32) -> (i32, i32) {
    %c1_i32 = arith.constant 1 : i32
    %0 = arith.muli %arg0, %c1_i32 : i32
    %1 = arith.addi %0, %arg1 : i32
    %c0_i32 = arith.constant 0 : i32
    %2 = arith.minsi %1, %c0_i32 : i32
    %c0_i32_0 = arith.constant 0 : i32
    %c0_i32_1 = arith.constant 0 : i32
    return %c0_i32_0, %2 : i32, i32
  }
  func.func @transform_3(%arg0: i32, %arg1: i32) -> (i32, i32) {
    %c1_i32 = arith.constant 1 : i32
    %0 = arith.muli %arg0, %c1_i32 : i32
    %1 = arith.addi %0, %arg1 : i32
    %c0_i32 = arith.constant 0 : i32
    %2 = arith.minsi %1, %c0_i32 : i32
    %c0_i32_0 = arith.constant 0 : i32
    %c0_i32_1 = arith.constant 0 : i32
    return %c0_i32_0, %2 : i32, i32
  }
  func.func @transform_4(%arg0: i32, %arg1: i32) -> (i32, i32) {
    %c1_i32 = arith.constant 1 : i32
    %0 = arith.muli %arg0, %c1_i32 : i32
    %1 = arith.addi %0, %arg1 : i32
    %c0_i32 = arith.constant 0 : i32
    %2 = arith.minsi %1, %c0_i32 : i32
    %c0_i32_0 = arith.constant 0 : i32
    %c0_i32_1 = arith.constant 0 : i32
    return %c0_i32_0, %2 : i32, i32
  }
  func.func @transform_5(%arg0: i32, %arg1: i32) -> (i32, i32) {
    %c1_i32 = arith.constant 1 : i32
    %0 = arith.muli %arg0, %c1_i32 : i32
    %1 = arith.addi %0, %arg1 : i32
    %c0_i32 = arith.constant 0 : i32
    %2 = arith.minsi %1, %c0_i32 : i32
    %c0_i32_0 = arith.constant 0 : i32
    %c0_i32_1 = arith.constant 0 : i32
    return %c0_i32_0, %2 : i32, i32
  }
  func.func @transform_6(%arg0: i32, %arg1: i32) -> (i32, i32) {
    %c1_i32 = arith.constant 1 : i32
    %0 = arith.muli %arg0, %c1_i32 : i32
    %1 = arith.addi %0, %arg1 : i32
    %c0_i32 = arith.constant 0 : i32
    %2 = arith.minsi %1, %c0_i32 : i32
    %c0_i32_0 = arith.constant 0 : i32
    %c0_i32_1 = arith.constant 0 : i32
    return %c0_i32_0, %2 : i32, i32
  }
  func.func @transform_7(%arg0: i32, %arg1: i32) -> (i32, i32) {
    %c1_i32 = arith.constant 1 : i32
    %0 = arith.muli %arg0, %c1_i32 : i32
    %1 = arith.addi %0, %arg1 : i32
    %c0_i32 = arith.constant 0 : i32
    %2 = arith.minsi %1, %c0_i32 : i32
    %c0_i32_0 = arith.constant 0 : i32
    %c0_i32_1 = arith.constant 0 : i32
    return %c0_i32_0, %2 : i32, i32
  }
  func.func @transform_8(%arg0: i32, %arg1: i32) -> (i32, i32, i32) {
    %c1_i32 = arith.constant 1 : i32
    %0 = arith.muli %arg0, %c1_i32 : i32
    %1 = arith.addi %0, %arg1 : i32
    %c0_i32 = arith.constant 0 : i32
    %2 = arith.minsi %1, %c0_i32 : i32
    %c0_i32_0 = arith.constant 0 : i32
    %c0_i32_1 = arith.constant 0 : i32
    %c0_i32_2 = arith.constant 0 : i32
    return %c0_i32_0, %c0_i32_1, %2 : i32, i32, i32
  }
  func.func @transform_9(%arg0: i32, %arg1: i32) -> (i32, i32, i32) {
    %c0_i32 = arith.constant 0 : i32
    %c0_i32_0 = arith.constant 0 : i32
    %c0_i32_1 = arith.constant 0 : i32
    return %arg0, %c0_i32, %c0_i32_0 : i32, i32, i32
  }
}

</mosaic_0001>

<bundles_post_ra>
// kernel: tpu_custom_call.1
= control target key start
LH: loop header
LB: loop body
LE: loop exit
PB: predicated region body
PF: predicated region fallthrough
CT: control target
= control target key end

     0   :  { %vm336_vm0 = vcmask 1045504   ;;  %s817_s0 = inlined_call_operand.vmem [shape: f32[6,256], index: 0, kind: input, shape index: {}]   ;;  %s818_s1 = inlined_call_operand.vmem [shape: f32[6,256], index: 1, kind: input, shape index: {}]   ;;  %s819_s2 = inlined_call_operand.vmem [shape: f32[6,256], index: 2, kind: input, shape index: {}]   ;;  %s820_s3 = inlined_call_operand.vmem [shape: f32[6,256], index: 3, kind: input, shape index: {}]   ;;  %s821_s4 = inlined_call_operand.vmem [shape: f32[6,256], index: 4, kind: input, shape index: {}]   ;;  %s822_s5 = inlined_call_operand.vmem [shape: f32[6,256], index: 5, kind: input, shape index: {}]   ;;  %s823_s6 = inlined_call_operand.vmem [shape: f32[6,256], index: 6, kind: input, shape index: {}]   ;;  %s824_s7 = inlined_call_operand.vmem [shape: f32[6,256], index: 7, kind: input, shape index: {}]   ;;  %s825_s8 = inlined_call_operand.vmem [shape: f32[8,6,256], index: 8, kind: input, shape index: {}]   ;;  %s826_s9 = inlined_call_operand.hbm [shape: f32[1,1,1], index: 9, kind: output, shape index: {}]  }
   0x1   :  { %v374_v0 = vld [vmem:[%s819_s2] sm:$0x3f]  ;;  %v375_v1 = vld [vmem:[%s819_s2 + $0x8] sm:$0x3f]  ;;  %v587_v14 = vld [vmem:[%s825_s8 + $0x30] sm:$0x3f] }
   0x2   :  { %v585_v2 = vld [vmem:[%s825_s8 + $0x20] sm:$0x3f]  ;;  %v586_v3 = vld [vmem:[%s825_s8 + $0x28] sm:$0x3f]  ;;  %v588_v17 = vld [vmem:[%s825_s8 + $0x38] sm:$0x3f] }
   0x3   :  { %v328_v4 = vld [vmem:[%s817_s0] sm:$0x3f]  ;;  %v379_v5 = vsub.f32 %v374_v0, %v585_v2  ;;  %v380_v6 = vsub.f32 %v375_v1, %v586_v3  ;;  %v329_v7 = vld [vmem:[%s817_s0 + $0x8] sm:$0x3f]  ;;  %v583_v31 = vld [vmem:[%s825_s8 + $0x10] sm:$0x3f] }
   0x4   :  { %v330_v8 = vld [vmem:[%s825_s8] sm:$0x3f]  ;;  %v331_v9 = vld [vmem:[%s825_s8 + $0x8] sm:$0x3f]  ;;  %v584_v34 = vld [vmem:[%s825_s8 + $0x18] sm:$0x3f] }
   0x5   :  { %v332_v10 = vsub.f32 %v328_v4, %v330_v8  ;;  %v333_v11 = vsub.f32 %v329_v7, %v331_v9  ;;  %v397_v12 = vld [vmem:[%s820_s3] sm:$0x3f]  ;;  %v398_v13 = vld [vmem:[%s820_s3 + $0x8] sm:$0x3f]  ;;  %v381_v15 = vand.u32 2147483647, %v379_v5 }
   0x6   :  { %v382_v16 = vand.u32 2147483647, %v380_v6  ;;  %v402_v18 = vsub.f32 %v397_v12, %v587_v14  ;;  %v403_v21 = vsub.f32 %v398_v13, %v588_v17  ;;  %v351_v22 = vld [vmem:[%s818_s1] sm:$0x3f]  ;;  %v352_v26 = vld [vmem:[%s818_s1 + $0x8] sm:$0x3f] }
   0x7   :  { %v334_v19 = vand.u32 2147483647, %v332_v10  ;;  %v335_v20 = vand.u32 2147483647, %v333_v11  ;;  %v383_v23 = vsel %vm336_vm0, %v381_v15, 0.0  ;;  %v356_v35 = vsub.f32 %v351_v22, %v583_v31 }
   0x8   :  { %v384_v24 = vsel %vm336_vm0, %v382_v16, 0.0  ;;  %v404_v25 = vand.u32 2147483647, %v402_v18  ;;  %v405_v30 = vand.u32 2147483647, %v403_v21  ;;  %v357_v38 = vsub.f32 %v352_v26, %v584_v34 }
   0x9   :  { %v385_v27 = vadd.f32 %v384_v24, %v383_v23  ;;  %v337_v28 = vsel %vm336_vm0, %v334_v19, 0.0  ;;  %v338_v29 = vsel %vm336_vm0, %v335_v20, 0.0  ;;  %v443_v36 = vld [vmem:[%s822_s5] sm:$0x3f]  ;;  %v444_v39 = vld [vmem:[%s822_s5 + $0x8] sm:$0x3f] }
   0xa   :  { %v339_v32 = vadd.f32 %v338_v29, %v337_v28  ;;  %v406_v33 = vsel %vm336_vm0, %v404_v25, 0.0  ;;  %v407_v37 = vsel %vm336_vm0, %v405_v30, 0.0  ;;  %v591_v40 = vld [vmem:[%s825_s8 + $0x50] sm:$0x3f]  ;;  %v358_v42 = vand.u32 2147483647, %v356_v35 }
   0xb   :  { %386 = vadd.xlane.f32.xlu1 %v385_v27  ;;  %v408_v41 = vadd.f32 %v407_v37, %v406_v33  ;;  %v592_v43 = vld [vmem:[%s825_s8 + $0x58] sm:$0x3f]  ;;  %v448_v44 = vsub.f32 %v443_v36, %v591_v40  ;;  %v420_v45 = vld [vmem:[%s821_s4] sm:$0x3f]  ;;  %v359_v46 = vand.u32 2147483647, %v357_v38 }
   0xc   :  { %340 = vadd.xlane.f32.xlu0 %v339_v32  ;;  %v449_v47 = vsub.f32 %v444_v39, %v592_v43  ;;  %v421_v48 = vld [vmem:[%s821_s4 + $0x8] sm:$0x3f]  ;;  %v589_v49 = vld [vmem:[%s825_s8 + $0x40] sm:$0x3f]  ;;  %v360_v50 = vsel %vm336_vm0, %v358_v42, 0.0 }
   0xd   :  { %v450_v51 = vand.u32 2147483647, %v448_v44  ;;  %v590_v52 = vld [vmem:[%s825_s8 + $0x48] sm:$0x3f]  ;;  %v425_v53 = vsub.f32 %v420_v45, %v589_v49  ;;  %v361_v54 = vsel %vm336_vm0, %v359_v46, 0.0 }
   0xe   :  { %v451_v55 = vand.u32 2147483647, %v449_v47  ;;  %v426_v56 = vsub.f32 %v421_v48, %v590_v52  ;;  %v489_v57 = vld [vmem:[%s824_s7] sm:$0x3f]  ;;  %v362_v58 = vadd.f32 %v361_v54, %v360_v50  ;;  %v490_v61 = vld [vmem:[%s824_s7 + $0x8] sm:$0x3f] }
   0xf   :  { %409 = vadd.xlane.f32.xlu1 %v408_v41  ;;  %v452_v59 = vsel %vm336_vm0, %v450_v51, 0.0  ;;  %v427_v60 = vand.u32 2147483647, %v425_v53  ;;  %v595_v0 = vld [vmem:[%s825_s8 + $0x70] sm:$0x3f] }
  0x10   :  { %v453_v62 = vsel %vm336_vm0, %v451_v55, 0.0  ;;  %v428_v63 = vand.u32 2147483647, %v426_v56  ;;  %363 = vadd.xlane.f32.xlu0 %v362_v58  ;;  %v596_v3 = vld [vmem:[%s825_s8 + $0x78] sm:$0x3f]  ;;  %v494_v4 = vsub.f32 %v489_v57, %v595_v0 }
  0x11   :  { %v454_v1 = vadd.f32 %v453_v62, %v452_v59  ;;  %v429_v2 = vsel %vm336_vm0, %v427_v60, 0.0  ;;  %v466_v5 = vld [vmem:[%s823_s6] sm:$0x3f]  ;;  %v495_v7 = vsub.f32 %v490_v61, %v596_v3  ;;  %v467_v8 = vld [vmem:[%s823_s6 + $0x8] sm:$0x3f] }
  0x12   :  { %v430_v6 = vsel %vm336_vm0, %v428_v63, 0.0  ;;  %v593_v9 = vld [vmem:[%s825_s8 + $0x60] sm:$0x3f]  ;;  %v496_v11 = vand.u32 2147483647, %v494_v4 }
  0x13   :  { %455 = vadd.xlane.f32.xlu1 %v454_v1  ;;  %v431_v10 = vadd.f32 %v430_v6, %v429_v2  ;;  %v594_v12 = vld [vmem:[%s825_s8 + $0x68] sm:$0x3f]  ;;  %v471_v13 = vsub.f32 %v466_v5, %v593_v9 }
  0x14   :  { %14 = vsyncpa [#allocation3], 0  ;;  %v497_v14 = vand.u32 2147483647, %v495_v7  ;;  %v472_v15 = vsub.f32 %v467_v8, %v594_v12  ;;  %v498_v16 = vsel %vm336_vm0, %v496_v11, 0.0  ;;  %vm325_vm1 = vcmask 0  }
  0x15   :  { %432 = vadd.xlane.f32.xlu0 %v431_v10  ;;  %v473_v17 = vand.u32 2147483647, %v471_v13  ;;  %v639_v24 = vmov 0.0   ;;  %s640_s25 = smov [#allocation2]  }
  0x16   :  { %v499_v18 = vsel %vm336_vm0, %v497_v14, 0.0  ;;  %v474_v19 = vand.u32 2147483647, %v472_v15  ;;  %326 = vst.msk [vmem:[#allocation2] sm:$0x1] %vm325_vm1, %v639_v24  ;;  %s521_s5 = sshll.u32 %s640_s25, 4  ;;  %s522_s5 = int_to_ptr.vmem [resolvable:$true] %s521_s5 }
  0x17   :  { %v500_v20 = vadd.f32 %v499_v18, %v498_v16  ;;  %v475_v21 = vsel %vm336_vm0, %v473_v17, 0.0  ;;  %s615_s26 = scalar_lea.vmem %s522_s5, 16  ;;  %s619_s27 = scalar_lea.vmem %s522_s5, 32 }
  0x18   :  { %v476_v22 = vsel %vm336_vm0, %v474_v19, 0.0  ;;  %p616_p0 = scmp.ne.s32.totalorder %s522_s5, %s615_s26  ;;  %p620_p1 = scmp.lt.s32.totalorder %s522_s5, %s522_s5 }
  0x19   :  { %501 = vadd.xlane.f32.xlu1 %v500_v20  ;;  %v477_v23 = vadd.f32 %v476_v22, %v475_v21  ;;  %p621_p2 = scmp.lt.s32.totalorder %s619_s27, %s615_s26 }
  0x1b   :  { %478 = vadd.xlane.f32.xlu0 %v477_v23  ;;  %p622_p3 = por %p621_p2, %p620_p1 }
  0x1d   :  { %p623_p4 = pnand %p622_p3, %p616_p0 }
  0x98   :  { %v387_v25 = vpop.xlane.xlu1 %386 }
  0x99   :  { %v388_v26 = vrot.slane %v387_v25, 4  ;;  %v341_v27 = vpop.xlane.xlu0 %340 }
  0x9a   :  { %v342_v28 = vrot.slane %v341_v27, 4 }
  0x9b   :  { %v389_v29 = vadd.f32 %v388_v26, %v387_v25 }
  0x9c   :  { %v343_v30 = vadd.f32 %v342_v28, %v341_v27  ;;  %v410_v31 = vpop.xlane.xlu1 %409 }
  0x9d   :  { %v411_v32 = vrot.slane %v410_v31, 4  ;;  %v390_v34 = vrot.slane %v389_v29, 2  ;;  %v364_v36 = vpop.xlane.xlu0 %363 }
  0x9e   :  { %v344_v33 = vrot.slane %v343_v30, 2  ;;  %v365_v37 = vrot.slane %v364_v36, 4 }
  0x9f   :  { %v412_v35 = vadd.f32 %v411_v32, %v410_v31  ;;  %v391_v45 = vadd.f32 %v390_v34, %v389_v29 }
  0xa0   :  { %v345_v38 = vadd.f32 %v344_v33, %v343_v30  ;;  %v456_v40 = vpop.xlane.xlu1 %455  ;;  %v366_v41 = vadd.f32 %v365_v37, %v364_v36  ;;  %v327_v30 = vld [vmem:[#allocation2] sm:$0x1] }
  0xa1   :  { %v413_v39 = vrot.slane %v412_v35, 2  ;;  %v457_v42 = vrot.slane %v456_v40, 4  ;;  %v392_v56 = vrot.slane %v391_v45, 1 }
  0xa2   :  { %v346_v43 = vrot.slane %v345_v38, 1  ;;  %v433_v44 = vpop.xlane.xlu0 %432  ;;  %v367_v47 = vrot.slane %v366_v41, 2 }
  0xa3   :  { %v414_v46 = vadd.f32 %v413_v39, %v412_v35  ;;  %v458_v48 = vadd.f32 %v457_v42, %v456_v40  ;;  %v434_v49 = vrot.slane %v433_v44, 4  ;;  %v393_v3 = vadd.f32 %v392_v56, %v391_v45 }
  0xa4   :  { %v347_v50 = vadd.f32 %v346_v43, %v345_v38  ;;  %v368_v54 = vadd.f32 %v367_v47, %v366_v41 }
  0xa5   :  { %v415_v51 = vrot.slane %v414_v46, 1  ;;  %v459_v52 = vrot.slane %v458_v48, 2  ;;  %v435_v53 = vadd.f32 %v434_v49, %v433_v44 }
  0xa6   :  { %597 = vpush %v347_v50  ;;  %v502_v55 = vpop.xlane.xlu1 %501  ;;  %v369_v59 = vrot.slane %v368_v54, 1 }
  0xa7   :  { %v436_v57 = vrot.slane %v435_v53, 2  ;;  %v503_v58 = vrot.slane %v502_v55, 4  ;;  %v460_v60 = vadd.f32 %v459_v52, %v458_v48  ;;  %v416_v62 = vadd.f32 %v415_v51, %v414_v46 }
  0xa8   :  { %v479_v61 = vpop.xlane.xlu0 %478  ;;  %v370_v1 = vadd.f32 %v369_v59, %v368_v54 }
  0xa9   :  { %v504_v63 = vadd.f32 %v503_v58, %v502_v55  ;;  %v480_v0 = vrot.slane %v479_v61, 4  ;;  %v437_v2 = vadd.f32 %v436_v57, %v435_v53  ;;  %v461_v4 = vrot.slane %v460_v60, 1 }
  0xaa   :  { %599 = vpush %v370_v1 }
  0xab   :  { %v505_v5 = vrot.slane %v504_v63, 2  ;;  %v481_v6 = vadd.f32 %v480_v0, %v479_v61  ;;  %v438_v7 = vrot.slane %v437_v2, 1  ;;  %601 = vpush %v393_v3  ;;  %v462_v8 = vadd.f32 %v461_v4, %v460_v60 }
  0xac   :  { %603 = vpush %v416_v62 }
  0xad   :  { %v506_v9 = vadd.f32 %v505_v5, %v504_v63  ;;  %v482_v10 = vrot.slane %v481_v6, 2  ;;  %v439_v11 = vadd.f32 %v438_v7, %v437_v2 }
  0xaf   :  { %v483_v12 = vadd.f32 %v482_v10, %v481_v6  ;;  %605 = vpush %v439_v11  ;;  %v507_v13 = vrot.slane %v506_v9, 1 }
  0xb0   :  { %607 = vpush %v462_v8 }
  0xb1   :  { %v484_v14 = vrot.slane %v483_v12, 1  ;;  %v508_v15 = vadd.f32 %v507_v13, %v506_v9 }
  0xb3   :  { %v485_v16 = vadd.f32 %v484_v14, %v483_v12 }
  0xb5   :  { %609 = vpush %v485_v16 }
  0xb6   :  { %611 = vpush %v508_v15 }
  0xd7   :  { %s598_s6 = spop %597 }
  0xd8   :  { %v349_v17 = vstv %s598_s6 }
  0xdb   :  { %s600_s8 = spop %599 }
  0xdc   :  { %v372_v18 = vstv %s600_s8  ;;  %s602_s20 = spop %601 }
  0xdd   :  { %v373_v19 = vadd.f32 %v372_v18, %v349_v17  ;;  %s604_s21 = spop %603  ;;  %v395_v20 = vstv %s602_s20 }
  0xde   :  { %v418_v22 = vstv %s604_s21 }
  0xdf   :  { %v396_v21 = vadd.f32 %v395_v20, %v373_v19 }
  0xe0   :  { %s606_s2 = spop %605 }
  0xe1   :  { %v419_v23 = vadd.f32 %v418_v22, %v396_v21  ;;  %s608_s22 = spop %607  ;;  %v441_v24 = vstv %s606_s2 }
  0xe2   :  { %v464_v26 = vstv %s608_s22 }
  0xe3   :  { %v442_v25 = vadd.f32 %v441_v24, %v419_v23 }
  0xe5   :  { %v465_v27 = vadd.f32 %v464_v26, %v442_v25 }
  0xe6   :  { %s610_s23 = spop %609 }
  0xe7   :  { %v487_v28 = vstv %s610_s23  ;;  %s612_s24 = spop %611 }
  0xe8   :  { %v488_v29 = vadd.f32 %v487_v28, %v465_v27  ;;  %v510_v31 = vstv %s612_s24 }
  0xea   :  { %v511_v32 = vadd.f32 %v510_v31, %v488_v29 }
  0xec   :  { %v512_v33 = vadd.f32 %v511_v32, %v327_v30 }
  0xee   :  { %514 = vst.msk [vmem:[#allocation2] sm:$0x1] %vm325_vm1, %v512_v33 }
  0xef   :  { %626 = shalt.err (!%p623_p4)
}
  0xf0   :  { %s627_s29 = scalar_lea.hbm %s826_s9, 16 }
  0xf1   :  { %p628_p5 = scmp.ne.s32.totalorder %s826_s9, %s627_s29  ;;  %p631_p6 = scmp.lt.u32.totalorder %s627_s29, %s826_s9 }
  0xf3   :  { %p633_p7 = pnand %p631_p6, %p628_p5 }
  0xf5   :  { %636 = shalt.err (!%p633_p7)
}
  0xf6   :  { %524 = dma.vmem_to_hbm [thread:$0]  %s522_s5, 16, %s826_s9, [#allocation3]  }
  0xf7   :  { %637 = dma.done.wait [#allocation3], 16  }
  0xf8   :  { %638 = vsyncadd [#allocation3], 4294967280 }
  0xf9   :  { %528 = vsyncpa [#allocation3], 1 }

</bundles_post_ra>
